<compile_context>
chip_gen: v6e
topology: v6e:2x2x1
jax: 0.10.0
libtpu: 0.0.40
codegen_flags: <defaults>
</compile_context>

<pallas_src>
import math
import numpy as np

import jax
import jax.numpy as jnp
from jax.experimental import pallas as pl
from jax.experimental.pallas import tpu as pltpu

# ---- BackboneConfig analogue (small synthetic sizes) ----
D_MODEL = 32
NUM_HEADS = 4
NUM_HEADS_KV = 2
HEAD_DIM = D_MODEL // NUM_HEADS            # 8
D_INTERMEDIATE = 64                        # attn_mlp_d_intermediate
NORM_EPS = 1e-5

TQ = NUM_HEADS * HEAD_DIM                  # q_size  = 32
TKV = NUM_HEADS_KV * HEAD_DIM              # kv_size = 16
ROT = TQ + TKV                             # rotated column group = 48
TOTAL_EXT = 2 * ROT + TKV                  # widened in_proj output = 112
REP = NUM_HEADS // NUM_HEADS_KV            # GQA repetition factor = 2


def _layernorm(x, w, b, eps):
    mu = jnp.mean(x, axis=-1, keepdims=True)
    var = jnp.mean((x - mu) ** 2, axis=-1, keepdims=True)   # biased, like torch
    return (x - mu) * jax.lax.rsqrt(var + eps) * w + b


def _pair_swap(n):
    p = np.zeros((n, n), np.float32)
    for j in range(0, n, 2):
        p[j, j + 1] = 1.0
        p[j + 1, j] = 1.0
    return jnp.asarray(p)


def _block_kernel(x_ref, ln_ref, w_in_ref, rope_ref, w_out_ref,
                  w_fc1_ref, w_fc2_ref, kv_in_ref, out_ref, kv_out_ref):
    del kv_in_ref                     # aliased to kv_out_ref; write-only here
    xb = x_ref[0]                     # (S, D) f32 — one batch element per grid step
    S = xb.shape[0]

    ln1w, ln1b = ln_ref[0:1, :], ln_ref[1:2, :]
    ln2w, ln2b = ln_ref[2:3, :], ln_ref[3:4, :]

    # ---------------- attention branch ----------------
    h1 = _layernorm(xb, ln1w, ln1b, NORM_EPS)
    qkv = jnp.dot(h1.astype(jnp.bfloat16), w_in_ref[...],
                  preferred_element_type=jnp.float32)           # (S, 112)

    # rotary = base*cos + pair-swapped*(signed sin); q already carries 1/sqrt(hd)
    rot = (qkv[:, :ROT] * rope_ref[:, :ROT]
           + qkv[:, ROT:2 * ROT] * rope_ref[:, ROT:])            # (S, 48)
    q = rot[:, :TQ]                                              # (S, TQ)
    k = rot[:, TQ:]                                              # (S, TKV) -> cache + attn
    v = qkv[:, 2 * ROT:]                                         # (S, TKV)

    # regroup heads by kv head (GQA) with reshapes + (1,0,2) transposes only:
    #   q_g[g, r*S + s, d] = q[s, (g*REP + r)*Hd + d]
    q_g = (q.reshape(S, NUM_HEADS, HEAD_DIM)
             .transpose(1, 0, 2)
             .reshape(NUM_HEADS_KV, REP * S, HEAD_DIM))          # (Hkv, REP*S, Hd)
    k_g = k.reshape(S, NUM_HEADS_KV, HEAD_DIM).transpose(1, 0, 2)  # (Hkv, S, Hd)
    v_g = v.reshape(S, NUM_HEADS_KV, HEAD_DIM).transpose(1, 0, 2)  # (Hkv, S, Hd)

    # causal mask: query row rho = r*S + sq  ->  sq = rho % S
    ri = jax.lax.broadcasted_iota(jnp.int32, (REP * S, S), 0)
    ci = jax.lax.broadcasted_iota(jnp.int32, (REP * S, S), 1)
    valid = ci <= (ri % S)

    s = jnp.einsum("gqd,gkd->gqk",
                   q_g.astype(jnp.bfloat16), k_g.astype(jnp.bfloat16),
                   preferred_element_type=jnp.float32)           # (Hkv, REP*S, S)
    s = jnp.where(valid[None, :, :], s, -1e30)                   # finite fill, NaN-safe
    s = s - jnp.max(s, axis=-1, keepdims=True)
    p = jnp.exp(s)
    denom = jnp.sum(p, axis=-1, keepdims=True)
    p = p * pl.reciprocal(denom)                                 # exact (approx=False)

    y_g = jnp.einsum("gqk,gkd->gqd",
                     p.astype(jnp.bfloat16), v_g.astype(jnp.bfloat16),
                     preferred_element_type=jnp.float32)         # (Hkv, REP*S, Hd)

    # back to (S, TQ) head-major lanes, then ONE out-projection matmul
    y = (y_g.reshape(NUM_HEADS, S, HEAD_DIM)
            .transpose(1, 0, 2)
            .reshape(S, TQ))
    attn = jnp.dot(y.astype(jnp.bfloat16), w_out_ref[...],
                   preferred_element_type=jnp.float32)           # (S, D)
    x1 = xb + attn

    # ---------------- MLP branch (SwiGLU) ----------------
    h2 = _layernorm(x1, ln2w, ln2b, NORM_EPS)
    f = jnp.dot(h2.astype(jnp.bfloat16), w_fc1_ref[...],
                preferred_element_type=jnp.float32)              # (S, 2*DI)
    yg = f[:, :D_INTERMEDIATE]
    gate = f[:, D_INTERMEDIATE:]
    act = yg * (gate * jax.nn.sigmoid(gate))
    mlp = jnp.dot(act.astype(jnp.bfloat16), w_fc2_ref[...],
                  preferred_element_type=jnp.float32)            # (S, D)

    out_ref[0] = x1 + mlp
    # rotated k | v straight into the aliased kv-cache rows [0:S] of this batch elem
    kv_out_ref[0] = jnp.concatenate([k, v], axis=-1)             # (S, 2*TKV)


def transformer_block(x, params, freqs_cis):
    B, S, D = x.shape
    assert D == D_MODEL
    kv_cache = params["kv_cache"]                   # (B, MAX_SEQLEN, 2, Hkv, Hd)
    max_seqlen = kv_cache.shape[1]

    scale = 1.0 / math.sqrt(HEAD_DIM)

    # ---- host-side weight prep: fold RoPE pair-swap + q scale into in_proj ----
    w_in = params["w_in"]                           # (D, TQ + 2*TKV), pre-transposed
    Wq, Wk, Wv = w_in[:, :TQ], w_in[:, TQ:TQ + TKV], w_in[:, TQ + TKV:]
    Pq, Pk = _pair_swap(TQ), _pair_swap(TKV)
    # columns: [q*scale (32) | k (16) | q_swap*scale (32) | k_swap (16) | v (16)]
    w_in_ext = jnp.concatenate(
        [Wq * scale, Wk, (Wq @ Pq) * scale, Wk @ Pk, Wv], axis=1
    ).astype(jnp.bfloat16)                          # (D, 112)

    # rope tables for the rotated 48-column group: [cos(48) | signed sin(48)]
    cos = freqs_cis[..., 0]                         # (S, HEAD_DIM//2)
    sin = freqs_cis[..., 1]
    cos_e = jnp.repeat(cos, 2, axis=-1)             # c0 c0 c1 c1 ...
    sin_e = jnp.repeat(sin, 2, axis=-1)
    sign = jnp.tile(jnp.array([-1.0, 1.0], jnp.float32), HEAD_DIM // 2)
    sin_s = sin_e * sign[None, :]                   # -s0 +s0 -s1 +s1 ...
    nrep = ROT // HEAD_DIM                          # 6 rotated head slots
    rope_tab = jnp.concatenate([jnp.tile(cos_e, (1, nrep)),
                                jnp.tile(sin_s, (1, nrep))], axis=1
                               ).astype(jnp.float32)            # (S, 96), no batch tile

    ln_pack = jnp.concatenate([params["ln1_w"], params["ln1_b"],
                               params["ln2_w"], params["ln2_b"]], axis=0
                              ).astype(jnp.float32)             # (4, D)
    w_out = params["w_out"].astype(jnp.bfloat16)                # (TQ, D)
    w_fc1 = params["w_fc1"].astype(jnp.bfloat16)                # (D, 2*DI)
    w_fc2 = params["w_fc2"].astype(jnp.bfloat16)                # (DI, D)

    # flatten the (k|v, head, dim) tail so the kernel writes one contiguous row slab
    kv_flat = kv_cache.reshape(B, max_seqlen, 2 * TKV).astype(jnp.float32)

    grid_spec = pltpu.PrefetchScalarGridSpec(
        num_scalar_prefetch=0,
        grid=(B,),                                   # one batch element per grid step
        in_specs=[
            pl.BlockSpec((1, S, D), lambda b: (b, 0, 0)),            # x
            pl.BlockSpec((4, D), lambda b: (0, 0)),                  # packed LN w/b
            pl.BlockSpec((D, TOTAL_EXT), lambda b: (0, 0)),          # widened in_proj
            pl.BlockSpec((S, 2 * ROT), lambda b: (0, 0)),            # rope cos|sin
            pl.BlockSpec((TQ, D), lambda b: (0, 0)),                 # out_proj
            pl.BlockSpec((D, 2 * D_INTERMEDIATE), lambda b: (0, 0)), # fc1
            pl.BlockSpec((D_INTERMEDIATE, D), lambda b: (0, 0)),     # fc2
            pl.BlockSpec((1, S, 2 * TKV), lambda b: (b, 0, 0)),      # kv cache (aliased)
        ],
        out_specs=(
            pl.BlockSpec((1, S, D), lambda b: (b, 0, 0)),            # block output
            pl.BlockSpec((1, S, 2 * TKV), lambda b: (b, 0, 0)),      # kv cache rows [0:S]
        ),
    )

    out, kv_new = pl.pallas_call(
        _block_kernel,
        out_shape=(jax.ShapeDtypeStruct((B, S, D), jnp.float32),
                   jax.ShapeDtypeStruct((B, max_seqlen, 2 * TKV), jnp.float32)),
        grid_spec=grid_spec,
        input_output_aliases={7: 1},   # kv cache input buffer -> kv output (in-place)
        compiler_params=pltpu.CompilerParams(
            dimension_semantics=("parallel",),
            vmem_limit_bytes=32 * 1024 * 1024),
    )(x, ln_pack, w_in_ext, rope_tab, w_out, w_fc1, w_fc2, kv_flat)

    kv_cache_new = kv_new.reshape(B, max_seqlen, 2, NUM_HEADS_KV, HEAD_DIM)
    return out, kv_cache_new


# ---------------- pure-JAX reference (mirrors the torch forward) ----------------
def reference(x, params, freqs_cis):
    def ln(t, w, b):
        mu = t.mean(-1, keepdims=True)
        var = ((t - mu) ** 2).mean(-1, keepdims=True)
        return (t - mu) / jnp.sqrt(var + NORM_EPS) * w + b

    def rope(t, fc):                                  # t: (B,S,H,Hd)
        B, S, H, Hd = t.shape
        ts = t.reshape(B, S, H, Hd // 2, 2)
        fc = fc.reshape(1, S, 1, Hd // 2, 2)
        o0 = ts[..., 0] * fc[..., 0] - ts[..., 1] * fc[..., 1]
        o1 = ts[..., 1] * fc[..., 0] + ts[..., 0] * fc[..., 1]
        return jnp.stack([o0, o1], -1).reshape(B, S, H, Hd)

    B, S, D = x.shape
    h = ln(x, params["ln1_w"][0], params["ln1_b"][0])
    qkv = h @ params["w_in"]
    q = qkv[..., :TQ].reshape(B, S, NUM_HEADS, HEAD_DIM)
    k = qkv[..., TQ:TQ + TKV].reshape(B, S, NUM_HEADS_KV, HEAD_DIM)
    v = qkv[..., TQ + TKV:].reshape(B, S, NUM_HEADS_KV, HEAD_DIM)
    q = rope(q, freqs_cis)
    k = rope(k, freqs_cis)
    rep = NUM_HEADS // NUM_HEADS_KV
    k2 = jnp.repeat(k, rep, axis=2).transpose(0, 2, 1, 3)
    v2 = jnp.repeat(v, rep, axis=2).transpose(0, 2, 1, 3)
    qh = q.transpose(0, 2, 1, 3)
    s = jnp.einsum("bhqd,bhkd->bhqk", qh, k2) / math.sqrt(HEAD_DIM)
    mask = jnp.tril(jnp.ones((S, S), bool))
    s = jnp.where(mask, s, -jnp.inf)
    p = jax.nn.softmax(s, axis=-1)
    y = jnp.einsum("bhqk,bhkd->bhqd", p, v2)
    y = y.transpose(0, 2, 1, 3).reshape(B, S, TQ) @ params["w_out"]
    x1 = x + y
    h2 = ln(x1, params["ln2_w"][0], params["ln2_b"][0])
    f = h2 @ params["w_fc1"]
    yy, gate = f[..., :D_INTERMEDIATE], f[..., D_INTERMEDIATE:]
    return x1 + (yy * jax.nn.silu(gate)) @ params["w_fc2"]


if __name__ == "__main__":
    B, S, MAX_SEQLEN = 2, 8, 16
    key = jax.random.PRNGKey(0)
    keys = jax.random.split(key, 10)

    x = jax.random.normal(keys[0], (B, S, D_MODEL), jnp.float32)
    params = dict(
        ln1_w=(1.0 + 0.1 * jax.random.normal(keys[1], (1, D_MODEL))).astype(jnp.float32),
        ln1_b=(0.1 * jax.random.normal(keys[2], (1, D_MODEL))).astype(jnp.float32),
        w_in=(0.1 * jax.random.normal(keys[3], (D_MODEL, TQ + 2 * TKV))).astype(jnp.float32),
        w_out=(0.1 * jax.random.normal(keys[4], (TQ, D_MODEL))).astype(jnp.float32),
        ln2_w=(1.0 + 0.1 * jax.random.normal(keys[5], (1, D_MODEL))).astype(jnp.float32),
        ln2_b=(0.1 * jax.random.normal(keys[6], (1, D_MODEL))).astype(jnp.float32),
        w_fc1=(0.1 * jax.random.normal(keys[7], (D_MODEL, 2 * D_INTERMEDIATE))).astype(jnp.float32),
        w_fc2=(0.1 * jax.random.normal(keys[8], (D_INTERMEDIATE, D_MODEL))).astype(jnp.float32),
        kv_cache=jnp.zeros((B, MAX_SEQLEN, 2, NUM_HEADS_KV, HEAD_DIM), jnp.float32),
    )

    # rotary freqs_cis: (seqlen, head_dim//2, 2) with [cos, sin]
    pos = jnp.arange(S, dtype=jnp.float32)[:, None]
    inv_freq = 1.0 / (10000.0 ** (jnp.arange(0, HEAD_DIM, 2, dtype=jnp.float32) / HEAD_DIM))
    ang = pos * inv_freq[None, :]
    freqs_cis = jnp.stack([jnp.cos(ang), jnp.sin(ang)], axis=-1)

    out, kv_cache = transformer_block(x, params, freqs_cis)
    out = jax.block_until_ready(out)
    kv_cache = jax.block_until_ready(kv_cache)

    ref = reference(x, params, freqs_cis)
    # bf16 MXU operands (f32 accumulation) -> slightly looser tolerance than pure f32
    np.testing.assert_allclose(np.asarray(out), np.asarray(ref), rtol=5e-2, atol=5e-2)
    print("KERNEL_OK")
</pallas_src>

<mosaic_0001>
module attributes {stable_mosaic.version = 11 : i64} {
  func.func @_block_kernel(%arg0: i32, %arg1: memref<1x8x32xf32, #tpu.memory_space<vmem>>, %arg2: memref<4x32xf32, #tpu.memory_space<vmem>>, %arg3: memref<32x112xbf16, #tpu.memory_space<vmem>>, %arg4: memref<8x96xf32, #tpu.memory_space<vmem>>, %arg5: memref<32x32xbf16, #tpu.memory_space<vmem>>, %arg6: memref<32x128xbf16, #tpu.memory_space<vmem>>, %arg7: memref<64x32xbf16, #tpu.memory_space<vmem>>, %arg8: memref<1x8x32xf32, #tpu.memory_space<vmem>>, %arg9: memref<1x8x32xf32, #tpu.memory_space<vmem>>, %arg10: memref<1x8x32xf32, #tpu.memory_space<vmem>>) attributes {dimension_semantics = [#tpu.dimension_semantics<parallel>], iteration_bounds = array<i64: 2>, scalar_prefetch = 0 : i64, scratch_operands = 0 : i64, tpu.core_type = #tpu.core_type<tc>, window_params = [{transform_indices = @transform_0, window_bounds = array<i64: 1, 8, 32>}, {pipeline_mode = #tpu.pipeline_mode<synchronous>, transform_indices = @transform_1, window_bounds = array<i64: 4, 32>}, {pipeline_mode = #tpu.pipeline_mode<synchronous>, transform_indices = @transform_2, window_bounds = array<i64: 32, 112>}, {pipeline_mode = #tpu.pipeline_mode<synchronous>, transform_indices = @transform_3, window_bounds = array<i64: 8, 96>}, {pipeline_mode = #tpu.pipeline_mode<synchronous>, transform_indices = @transform_4, window_bounds = array<i64: 32, 32>}, {pipeline_mode = #tpu.pipeline_mode<synchronous>, transform_indices = @transform_5, window_bounds = array<i64: 32, 128>}, {pipeline_mode = #tpu.pipeline_mode<synchronous>, transform_indices = @transform_6, window_bounds = array<i64: 64, 32>}, {transform_indices = @transform_7, window_bounds = array<i64: 1, 8, 32>}, {transform_indices = @transform_8, window_bounds = array<i64: 1, 8, 32>}, {transform_indices = @transform_9, window_bounds = array<i64: 1, 8, 32>}]} {
    %c0 = arith.constant 0 : index
    %c0_0 = arith.constant 0 : index
    %c0_1 = arith.constant 0 : index
    %0 = vector.load %arg1[%c0, %c0_0, %c0_1] : memref<1x8x32xf32, #tpu.memory_space<vmem>>, vector<1x8x32xf32>
    %1 = vector.shape_cast %0 : vector<1x8x32xf32> to vector<8x32xf32>
    %c0_2 = arith.constant 0 : index
    %c0_3 = arith.constant 0 : index
    %2 = vector.load %arg2[%c0_2, %c0_3] : memref<4x32xf32, #tpu.memory_space<vmem>>, vector<1x32xf32>
    %c1 = arith.constant 1 : index
    %c0_4 = arith.constant 0 : index
    %3 = vector.load %arg2[%c1, %c0_4] : memref<4x32xf32, #tpu.memory_space<vmem>>, vector<1x32xf32>
    %c2 = arith.constant 2 : index
    %c0_5 = arith.constant 0 : index
    %4 = vector.load %arg2[%c2, %c0_5] : memref<4x32xf32, #tpu.memory_space<vmem>>, vector<1x32xf32>
    %c3 = arith.constant 3 : index
    %c0_6 = arith.constant 0 : index
    %5 = vector.load %arg2[%c3, %c0_6] : memref<4x32xf32, #tpu.memory_space<vmem>>, vector<1x32xf32>
    %cst = arith.constant dense<0.000000e+00> : vector<8xf32>
    %6 = vector.multi_reduction <add>, %1, %cst [1] : vector<8x32xf32> to vector<8xf32>
    %7 = vector.shape_cast %6 : vector<8xf32> to vector<8x1xf32>
    %cst_7 = arith.constant 3.200000e+01 : f32
    %8 = vector.broadcast %cst_7 : f32 to vector<8x1xf32>
    %9 = arith.divf %7, %8 : vector<8x1xf32>
    %10 = vector.broadcast %9 : vector<8x1xf32> to vector<8x32xf32>
    %11 = arith.subf %1, %10 : vector<8x32xf32>
    %12 = arith.mulf %11, %11 : vector<8x32xf32>
    %cst_8 = arith.constant dense<0.000000e+00> : vector<8xf32>
    %13 = vector.multi_reduction <add>, %12, %cst_8 [1] : vector<8x32xf32> to vector<8xf32>
    %14 = vector.shape_cast %13 : vector<8xf32> to vector<8x1xf32>
    %cst_9 = arith.constant 3.200000e+01 : f32
    %15 = vector.broadcast %cst_9 : f32 to vector<8x1xf32>
    %16 = arith.divf %14, %15 : vector<8x1xf32>
    %17 = vector.broadcast %9 : vector<8x1xf32> to vector<8x32xf32>
    %18 = arith.subf %1, %17 : vector<8x32xf32>
    %cst_10 = arith.constant 9.99999974E-6 : f32
    %19 = vector.broadcast %cst_10 : f32 to vector<8x1xf32>
    %20 = arith.addf %16, %19 : vector<8x1xf32>
    %21 = math.rsqrt %20 : vector<8x1xf32>
    %22 = vector.broadcast %21 : vector<8x1xf32> to vector<8x32xf32>
    %23 = arith.mulf %18, %22 : vector<8x32xf32>
    %24 = vector.broadcast %2 : vector<1x32xf32> to vector<8x32xf32>
    %25 = arith.mulf %23, %24 : vector<8x32xf32>
    %26 = vector.broadcast %3 : vector<1x32xf32> to vector<8x32xf32>
    %27 = arith.addf %25, %26 : vector<8x32xf32>
    %28 = arith.truncf %27 : vector<8x32xf32> to vector<8x32xbf16>
    %c0_11 = arith.constant 0 : index
    %c0_12 = arith.constant 0 : index
    %29 = vector.load %arg3[%c0_11, %c0_12] : memref<32x112xbf16, #tpu.memory_space<vmem>>, vector<32x112xbf16>
    %cst_13 = arith.constant dense<0.000000e+00> : vector<8x112xf32>
    %30 = tpu.matmul %28, %29, %cst_13 {dimension_numbers = #tpu.dot_dimension_numbers<[1], [0], [0], [1], [0, 0, 1, 1], [], []>} : vector<8x32xbf16>, vector<32x112xbf16>, vector<8x112xf32> -> vector<8x112xf32>
    %31 = vector.extract_strided_slice %30 {offsets = [0, 0], sizes = [8, 48], strides = [1, 1]} : vector<8x112xf32> to vector<8x48xf32>
    %c0_14 = arith.constant 0 : index
    %c0_15 = arith.constant 0 : index
    %32 = vector.load %arg4[%c0_14, %c0_15] : memref<8x96xf32, #tpu.memory_space<vmem>>, vector<8x48xf32>
    %33 = arith.mulf %31, %32 : vector<8x48xf32>
    %34 = vector.extract_strided_slice %30 {offsets = [0, 48], sizes = [8, 48], strides = [1, 1]} : vector<8x112xf32> to vector<8x48xf32>
    %c0_16 = arith.constant 0 : index
    %c48 = arith.constant 48 : index
    %35 = vector.load %arg4[%c0_16, %c48] : memref<8x96xf32, #tpu.memory_space<vmem>>, vector<8x48xf32>
    %36 = arith.mulf %34, %35 : vector<8x48xf32>
    %37 = arith.addf %33, %36 : vector<8x48xf32>
    %38 = vector.extract_strided_slice %37 {offsets = [0, 0], sizes = [8, 32], strides = [1, 1]} : vector<8x48xf32> to vector<8x32xf32>
    %39 = vector.extract_strided_slice %37 {offsets = [0, 32], sizes = [8, 16], strides = [1, 1]} : vector<8x48xf32> to vector<8x16xf32>
    %40 = vector.extract_strided_slice %30 {offsets = [0, 96], sizes = [8, 16], strides = [1, 1]} : vector<8x112xf32> to vector<8x16xf32>
    %41 = vector.shape_cast %38 : vector<8x32xf32> to vector<8x4x8xf32>
    %42 = tpu.transpose %41, [1, 0, 2] : vector<8x4x8xf32> -> vector<4x8x8xf32>
    %43 = vector.shape_cast %42 : vector<4x8x8xf32> to vector<2x16x8xf32>
    %44 = vector.shape_cast %39 : vector<8x16xf32> to vector<8x2x8xf32>
    %45 = tpu.transpose %44, [1, 0, 2] : vector<8x2x8xf32> -> vector<2x8x8xf32>
    %46 = vector.shape_cast %40 : vector<8x16xf32> to vector<8x2x8xf32>
    %47 = tpu.transpose %46, [1, 0, 2] : vector<8x2x8xf32> -> vector<2x8x8xf32>
    %48 = tpu.iota {dimensions = array<i32: 0>} : vector<16x8xi32>
    %49 = tpu.iota {dimensions = array<i32: 1>} : vector<16x8xi32>
    %c8_i32 = arith.constant 8 : i32
    %c0_i32 = arith.constant 0 : i32
    %50 = arith.cmpi eq, %c8_i32, %c0_i32 : i32
    %c1_i32 = arith.constant 1 : i32
    %51 = arith.select %50, %c1_i32, %c8_i32 : i32
    %52 = vector.broadcast %51 : i32 to vector<16x8xi32>
    %53 = arith.remsi %48, %52 : vector<16x8xi32>
    %c0_i32_17 = arith.constant 0 : i32
    %54 = vector.broadcast %c0_i32_17 : i32 to vector<16x8xi32>
    %55 = arith.cmpi ne, %53, %54 : vector<16x8xi32>
    %c0_i32_18 = arith.constant 0 : i32
    %56 = vector.broadcast %c0_i32_18 : i32 to vector<16x8xi32>
    %57 = arith.cmpi slt, %53, %56 : vector<16x8xi32>
    %c0_i32_19 = arith.constant 0 : i32
    %58 = arith.cmpi slt, %51, %c0_i32_19 : i32
    %59 = vector.broadcast %58 : i1 to vector<16x8xi1>
    %60 = vector.broadcast %59 : vector<16x8xi1> to vector<16x8xi1>
    %61 = arith.xori %57, %60 : vector<16x8xi1>
    %62 = arith.andi %61, %55 : vector<16x8xi1>
    %63 = vector.broadcast %51 : i32 to vector<16x8xi32>
    %64 = arith.addi %53, %63 : vector<16x8xi32>
    %65 = arith.select %62, %64, %53 : vector<16x8xi1>, vector<16x8xi32>
    %66 = arith.cmpi sle, %49, %65 : vector<16x8xi32>
    %67 = arith.truncf %43 : vector<2x16x8xf32> to vector<2x16x8xbf16>
    %68 = arith.truncf %45 : vector<2x8x8xf32> to vector<2x8x8xbf16>
    "tpu.trace_start"() <{level = 10 : i32, message = "gqd,gkd->gqk"}> : () -> ()
    %cst_20 = arith.constant dense<0.000000e+00> : vector<2x16x8xf32>
    %69 = tpu.matmul %67, %68, %cst_20 {dimension_numbers = #tpu.dot_dimension_numbers<[2], [2], [1], [1], [0, 0, 0, 1, 1, 1], [0], [0]>} : vector<2x16x8xbf16>, vector<2x8x8xbf16>, vector<2x16x8xf32> -> vector<2x16x8xf32>
    "tpu.trace_stop"() : () -> ()
    %70 = vector.shape_cast %66 : vector<16x8xi1> to vector<1x16x8xi1>
    %cst_21 = arith.constant -1.000000e+30 : f32
    %71 = vector.shape_cast %70 : vector<1x16x8xi1> to vector<1x16x8xi1>
    %72 = vector.broadcast %71 : vector<1x16x8xi1> to vector<2x16x8xi1>
    %73 = vector.broadcast %cst_21 : f32 to vector<2x16x8xf32>
    %74 = arith.select %72, %69, %73 : vector<2x16x8xi1>, vector<2x16x8xf32>
    %cst_22 = arith.constant dense<0xFF800000> : vector<2x16xf32>
    %75 = vector.multi_reduction <maximumf>, %74, %cst_22 [2] : vector<2x16x8xf32> to vector<2x16xf32>
    %76 = vector.shape_cast %75 : vector<2x16xf32> to vector<2x16x1xf32>
    %77 = vector.broadcast %76 : vector<2x16x1xf32> to vector<2x16x8xf32>
    %78 = arith.subf %74, %77 : vector<2x16x8xf32>
    %79 = math.exp %78 : vector<2x16x8xf32>
    %cst_23 = arith.constant dense<0.000000e+00> : vector<2x16xf32>
    %80 = vector.multi_reduction <add>, %79, %cst_23 [2] : vector<2x16x8xf32> to vector<2x16xf32>
    %81 = vector.shape_cast %80 : vector<2x16xf32> to vector<2x16x1xf32>
    %82 = tpu.reciprocal %81 : vector<2x16x1xf32> -> vector<2x16x1xf32>
    %83 = vector.broadcast %82 : vector<2x16x1xf32> to vector<2x16x8xf32>
    %84 = arith.mulf %79, %83 : vector<2x16x8xf32>
    %85 = arith.truncf %84 : vector<2x16x8xf32> to vector<2x16x8xbf16>
    %86 = arith.truncf %47 : vector<2x8x8xf32> to vector<2x8x8xbf16>
    "tpu.trace_start"() <{level = 10 : i32, message = "gqk,gkd->gqd"}> : () -> ()
    %cst_24 = arith.constant dense<0.000000e+00> : vector<2x16x8xf32>
    %87 = tpu.matmul %85, %86, %cst_24 {dimension_numbers = #tpu.dot_dimension_numbers<[2], [1], [1], [2], [0, 0, 0, 1, 1, 2], [0], [0]>} : vector<2x16x8xbf16>, vector<2x8x8xbf16>, vector<2x16x8xf32> -> vector<2x16x8xf32>
    "tpu.trace_stop"() : () -> ()
    %88 = vector.shape_cast %87 : vector<2x16x8xf32> to vector<4x8x8xf32>
    %89 = tpu.transpose %88, [1, 0, 2] : vector<4x8x8xf32> -> vector<8x4x8xf32>
    %90 = vector.shape_cast %89 : vector<8x4x8xf32> to vector<8x32xf32>
    %91 = arith.truncf %90 : vector<8x32xf32> to vector<8x32xbf16>
    %c0_25 = arith.constant 0 : index
    %c0_26 = arith.constant 0 : index
    %92 = vector.load %arg5[%c0_25, %c0_26] : memref<32x32xbf16, #tpu.memory_space<vmem>>, vector<32x32xbf16>
    %cst_27 = arith.constant dense<0.000000e+00> : vector<8x32xf32>
    %93 = tpu.matmul %91, %92, %cst_27 {dimension_numbers = #tpu.dot_dimension_numbers<[1], [0], [0], [1], [0, 0, 1, 1], [], []>} : vector<8x32xbf16>, vector<32x32xbf16>, vector<8x32xf32> -> vector<8x32xf32>
    %94 = arith.addf %1, %93 : vector<8x32xf32>
    %cst_28 = arith.constant dense<0.000000e+00> : vector<8xf32>
    %95 = vector.multi_reduction <add>, %94, %cst_28 [1] : vector<8x32xf32> to vector<8xf32>
    %96 = vector.shape_cast %95 : vector<8xf32> to vector<8x1xf32>
    %cst_29 = arith.constant 3.200000e+01 : f32
    %97 = vector.broadcast %cst_29 : f32 to vector<8x1xf32>
    %98 = arith.divf %96, %97 : vector<8x1xf32>
    %99 = vector.broadcast %98 : vector<8x1xf32> to vector<8x32xf32>
    %100 = arith.subf %94, %99 : vector<8x32xf32>
    %101 = arith.mulf %100, %100 : vector<8x32xf32>
    %cst_30 = arith.constant dense<0.000000e+00> : vector<8xf32>
    %102 = vector.multi_reduction <add>, %101, %cst_30 [1] : vector<8x32xf32> to vector<8xf32>
    %103 = vector.shape_cast %102 : vector<8xf32> to vector<8x1xf32>
    %cst_31 = arith.constant 3.200000e+01 : f32
    %104 = vector.broadcast %cst_31 : f32 to vector<8x1xf32>
    %105 = arith.divf %103, %104 : vector<8x1xf32>
    %106 = vector.broadcast %98 : vector<8x1xf32> to vector<8x32xf32>
    %107 = arith.subf %94, %106 : vector<8x32xf32>
    %cst_32 = arith.constant 9.99999974E-6 : f32
    %108 = vector.broadcast %cst_32 : f32 to vector<8x1xf32>
    %109 = arith.addf %105, %108 : vector<8x1xf32>
    %110 = math.rsqrt %109 : vector<8x1xf32>
    %111 = vector.broadcast %110 : vector<8x1xf32> to vector<8x32xf32>
    %112 = arith.mulf %107, %111 : vector<8x32xf32>
    %113 = vector.broadcast %4 : vector<1x32xf32> to vector<8x32xf32>
    %114 = arith.mulf %112, %113 : vector<8x32xf32>
    %115 = vector.broadcast %5 : vector<1x32xf32> to vector<8x32xf32>
    %116 = arith.addf %114, %115 : vector<8x32xf32>
    %117 = arith.truncf %116 : vector<8x32xf32> to vector<8x32xbf16>
    %c0_33 = arith.constant 0 : index
    %c0_34 = arith.constant 0 : index
    %118 = vector.load %arg6[%c0_33, %c0_34] : memref<32x128xbf16, #tpu.memory_space<vmem>>, vector<32x128xbf16>
    %cst_35 = arith.constant dense<0.000000e+00> : vector<8x128xf32>
    %119 = tpu.matmul %117, %118, %cst_35 {dimension_numbers = #tpu.dot_dimension_numbers<[1], [0], [0], [1], [0, 0, 1, 1], [], []>} : vector<8x32xbf16>, vector<32x128xbf16>, vector<8x128xf32> -> vector<8x128xf32>
    %120 = vector.extract_strided_slice %119 {offsets = [0, 0], sizes = [8, 64], strides = [1, 1]} : vector<8x128xf32> to vector<8x64xf32>
    %121 = vector.extract_strided_slice %119 {offsets = [0, 64], sizes = [8, 64], strides = [1, 1]} : vector<8x128xf32> to vector<8x64xf32>
    %122 = arith.negf %121 : vector<8x64xf32>
    %123 = math.exp %122 : vector<8x64xf32>
    %cst_36 = arith.constant 1.000000e+00 : f32
    %124 = vector.broadcast %cst_36 : f32 to vector<8x64xf32>
    %125 = arith.addf %124, %123 : vector<8x64xf32>
    %126 = arith.divf %124, %125 : vector<8x64xf32>
    %127 = arith.mulf %121, %126 : vector<8x64xf32>
    %128 = arith.mulf %120, %127 : vector<8x64xf32>
    %129 = arith.truncf %128 : vector<8x64xf32> to vector<8x64xbf16>
    %c0_37 = arith.constant 0 : index
    %c0_38 = arith.constant 0 : index
    %130 = vector.load %arg7[%c0_37, %c0_38] : memref<64x32xbf16, #tpu.memory_space<vmem>>, vector<64x32xbf16>
    %cst_39 = arith.constant dense<0.000000e+00> : vector<8x32xf32>
    %131 = tpu.matmul %129, %130, %cst_39 {dimension_numbers = #tpu.dot_dimension_numbers<[1], [0], [0], [1], [0, 0, 1, 1], [], []>} : vector<8x64xbf16>, vector<64x32xbf16>, vector<8x32xf32> -> vector<8x32xf32>
    %132 = arith.addf %94, %131 : vector<8x32xf32>
    %c0_40 = arith.constant 0 : index
    %c0_41 = arith.constant 0 : index
    %c0_42 = arith.constant 0 : index
    %133 = vector.load %arg9[%c0_40, %c0_41, %c0_42] : memref<1x8x32xf32, #tpu.memory_space<vmem>>, vector<1x8x32xf32>
    %134 = vector.shape_cast %133 : vector<1x8x32xf32> to vector<8x32xf32>
    %135 = vector.shape_cast %132 : vector<8x32xf32> to vector<1x8x32xf32>
    tpu.vector_store %arg9[%c0_40, %c0_41, %c0_42], %135 {strides = array<i32>} : memref<1x8x32xf32, #tpu.memory_space<vmem>>, vector<1x8x32xf32>,
    %136 = tpu.concatenate %39, %40 in 1 : vector<8x16xf32>, vector<8x16xf32> -> vector<8x32xf32>
    %c0_43 = arith.constant 0 : index
    %c0_44 = arith.constant 0 : index
    %c0_45 = arith.constant 0 : index
    %137 = vector.load %arg10[%c0_43, %c0_44, %c0_45] : memref<1x8x32xf32, #tpu.memory_space<vmem>>, vector<1x8x32xf32>
    %138 = vector.shape_cast %137 : vector<1x8x32xf32> to vector<8x32xf32>
    %139 = vector.shape_cast %136 : vector<8x32xf32> to vector<1x8x32xf32>
    tpu.vector_store %arg10[%c0_43, %c0_44, %c0_45], %139 {strides = array<i32>} : memref<1x8x32xf32, #tpu.memory_space<vmem>>, vector<1x8x32xf32>,
    return
  }
  func.func @transform_0(%arg0: i32) -> (i32, i32, i32) {
    %c0_i32 = arith.constant 0 : i32
    %c0_i32_0 = arith.constant 0 : i32
    %c0_i32_1 = arith.constant 0 : i32
    return %arg0, %c0_i32, %c0_i32_0 : i32, i32, i32
  }
  func.func @transform_1(%arg0: i32) -> (i32, i32) {
    %c0_i32 = arith.constant 0 : i32
    %c0_i32_0 = arith.constant 0 : i32
    %c0_i32_1 = arith.constant 0 : i32
    return %c0_i32, %c0_i32_0 : i32, i32
  }
  func.func @transform_2(%arg0: i32) -> (i32, i32) {
    %c0_i32 = arith.constant 0 : i32
    %c0_i32_0 = arith.constant 0 : i32
    %c0_i32_1 = arith.constant 0 : i32
    return %c0_i32, %c0_i32_0 : i32, i32
  }
  func.func @transform_3(%arg0: i32) -> (i32, i32) {
    %c0_i32 = arith.constant 0 : i32
    %c0_i32_0 = arith.constant 0 : i32
    %c0_i32_1 = arith.constant 0 : i32
    return %c0_i32, %c0_i32_0 : i32, i32
  }
  func.func @transform_4(%arg0: i32) -> (i32, i32) {
    %c0_i32 = arith.constant 0 : i32
    %c0_i32_0 = arith.constant 0 : i32
    %c0_i32_1 = arith.constant 0 : i32
    return %c0_i32, %c0_i32_0 : i32, i32
  }
  func.func @transform_5(%arg0: i32) -> (i32, i32) {
    %c0_i32 = arith.constant 0 : i32
    %c0_i32_0 = arith.constant 0 : i32
    %c0_i32_1 = arith.constant 0 : i32
    return %c0_i32, %c0_i32_0 : i32, i32
  }
  func.func @transform_6(%arg0: i32) -> (i32, i32) {
    %c0_i32 = arith.constant 0 : i32
    %c0_i32_0 = arith.constant 0 : i32
    %c0_i32_1 = arith.constant 0 : i32
    return %c0_i32, %c0_i32_0 : i32, i32
  }
  func.func @transform_7(%arg0: i32) -> (i32, i32, i32) {
    %c0_i32 = arith.constant 0 : i32
    %c0_i32_0 = arith.constant 0 : i32
    %c0_i32_1 = arith.constant 0 : i32
    return %arg0, %c0_i32, %c0_i32_0 : i32, i32, i32
  }
  func.func @transform_8(%arg0: i32) -> (i32, i32, i32) {
    %c0_i32 = arith.constant 0 : i32
    %c0_i32_0 = arith.constant 0 : i32
    %c0_i32_1 = arith.constant 0 : i32
    return %arg0, %c0_i32, %c0_i32_0 : i32, i32, i32
  }
  func.func @transform_9(%arg0: i32) -> (i32, i32, i32) {
    %c0_i32 = arith.constant 0 : i32
    %c0_i32_0 = arith.constant 0 : i32
    %c0_i32_1 = arith.constant 0 : i32
    return %arg0, %c0_i32, %c0_i32_0 : i32, i32, i32
  }
}

</mosaic_0001>

<bundles_post_ra>
// kernel: tpu_custom_call.1
= control target key start
LH: loop header
LB: loop body
LE: loop exit
PB: predicated region body
PF: predicated region fallthrough
CT: control target
= control target key end

     0   :  { %15 = vsyncpa [#allocation3], 0  ;;  %s2496_s0 = inlined_call_operand.vmem [shape: f32[2,8,32], index: 0, kind: input, shape index: {}]   ;;  %s2497_s1 = inlined_call_operand.vmem [shape: f32[4,32], index: 1, kind: input, shape index: {}]   ;;  %s2498_s2 = inlined_call_operand.vmem [shape: bf16[32,112], index: 2, kind: input, shape index: {}]   ;;  %s2499_s3 = inlined_call_operand.vmem [shape: f32[8,96], index: 3, kind: input, shape index: {}]   ;;  %s2500_s4 = inlined_call_operand.vmem [shape: bf16[32,32], index: 4, kind: input, shape index: {}]   ;;  %s2501_s5 = inlined_call_operand.vmem [shape: bf16[32,128], index: 5, kind: input, shape index: {}]   ;;  %s2502_s6 = inlined_call_operand.vmem [shape: bf16[64,32], index: 6, kind: input, shape index: {}]   ;;  %s2503_s7 = inlined_call_operand.hbm [shape: f32[2,16,32], index: 7, kind: input, shape index: {}, may-alias: {7,9}]   ;;  %s2504_s8 = inlined_call_operand.hbm [shape: f32[2,8,32], index: 8, kind: output, shape index: {0}]   ;;  %s2505_s9 = inlined_call_operand.hbm [shape: f32[2,16,32], index: 9, kind: output, shape index: {1}, may-alias: {7,9}]  }
   0x1   :  { %17 = vsyncpa [#allocation3 + $0x1], 0 }
   0x2   :  { %18 = vsyncpa [#allocation4], 0 }
   0x3   :  { %20 = vsyncpa [#allocation4 + $0x1], 0 }
   0x4   :  { %21 = vsyncpa [#allocation7], 0 }
   0x5   :  { %23 = vsyncpa [#allocation7 + $0x1], 0  ;;  %s2113_s30 = smov 0   ;;  %s2115_s10 = smov 0  }
   0x6   :  { %s2117_s11 = smov 0   ;;  %s2119_s12 = smov 0  }
   0x7 LB: > { %2510 = sst [smem:[#allocation11_spill]] %s2039_s11  ;;  %s2134_s13 = sadd.s32 4294967295, %s2043_s12   ;;  %s2043_s12 = sphi %s2119_s12, %s2528_s12   ;;  %s2039_s11 = sphi %s2117_s11, %s2525_s11   ;;  %s2035_s10 = sphi %s2115_s10, %s2527_s10   ;;  %s2031_s30 = sphi %s2113_s30, %s2526_s30  }
   0x8   : > { %s1689_s14 = sadd.s32 4294967294, %s2043_s12   ;;  %s2138_s15 = sadd.s32 1, %s2043_s12  }
   0x9   : > { %s188_s16 = sadd.s32 1, %s2039_s11  ;;  %s185_s17 = ssub.s32 %s2043_s12, %s2138_s15 }
   0xa   : > { %p195_p0 = scmp.ne.s32.totalorder %s2039_s11, %s2035_s10  ;;  %p186_p1 = scmp.eq.s32.totalorder %s185_s17, 0 }
   0xb   : > { %p196_p2 = scmp.eq.s32.totalorder %s2043_s12, 0  ;;  %p201_p3 = scmp.ne.s32.totalorder %s2035_s10, %s2031_s30 }
   0xc   : > { %p202_p4 = scmp.eq.s32.totalorder %s2134_s13, 0  ;;  %p225_p7 = scmp.eq.s32.totalorder %s2134_s13, 1 }
   0xd   : > { %s2150_s18 = scalar_select %p186_p1, %s2039_s11, %s188_s16  }
   0xe   : > { %p2152_p5 = por %p196_p2, %p195_p0  ;;  %p2156_p6 = por %p202_p4, %p201_p3 }
   0xf   : > { %2511 = sst [smem:[#allocation12_spill]] %s2150_s18  ;;  %p231_p8 = scmp.eq.s32.totalorder %s1689_s14, 1 }
  0x10   : > { %s2513_s20 = scalar_select %p2156_p6, 1, 0 }
  0x11   : > { %p1838_p10 = scmp.lt.s32.totalorder %s2043_s12, 2  ;;  %p2163_p11 = por %p225_p7, %p195_p0 }
  0x12   : > { %p2167_p12 = por %p231_p8, %p201_p3  ;;  %s302_s23 = sand.u32 1, %s2039_s11  }
  0x13   : > { %s2514_s21 = scalar_select %p2163_p11, 1, 0 }
  0x14   : > { %s2515_s22 = scalar_select %p2167_p12, 1, 0 }
  0x15   : > { %s1737_s24 = sshll.u32 %s2043_s12, 8  ;;  %s1692_s25 = sshll.u32 %s302_s23, 3 }
  0x16   : > { %s2176_s28 = scalar_lea.hbm %s2503_s7, %s1737_s24  ;;  %s306_s29 = scalar_lea.vmem [#allocation2], %s1692_s25 }
  0x17   : > { %s314_s14 = sshll.u32 %s306_s29, 4  ;;  %p2180_p13 = pnand %p1838_p10, %p2152_p5  ;;  %s2184_s14 = int_to_ptr.vmem [resolvable:$true] %s314_s14 }
  0x18   : > { %s303_s17 = scalar_lea.sflag [#allocation3], %s302_s23  ;;  %s1921_s18 = scalar_lea.hbm %s2176_s28, 128 }
  0x19   : > { %p1922_p2 = scmp.ne.s32.totalorder %s2176_s28, %s1921_s18  ;;  %p1923_p3 = pneg %p2180_p13 }
  0x1a   : > { %s1926_s19 = scalar_lea.hbm %s2503_s7, 512  ;;  %p1927_p5 = scmp.lt.s32.totalorder %s2176_s28, %s2503_s7 }
  0x1b   : > { %p1924_p4 = pnand %p1923_p3, %p1922_p2  ;;  %p1928_p8 = scmp.lt.s32.totalorder %s1926_s19, %s1921_s18 }
  0x1d   : > { %p1925_p7 = pneg %p1924_p4  ;;  %p1929_p10 = por %p1928_p8, %p1927_p5 }
  0x1f   : > { %p1930_p9 = pnand %p1929_p10, %p1925_p7 }
  0x21   : > { %1933 = shalt.err (!%p1930_p9)
}
  0x22   : > { %s1934_s23 = scalar_lea.vmem %s2184_s14, 128  ;;  %s2045_s29 = smov [#allocation2]  }
  0x23   : > { %p1935_p0 = scmp.ne.s32.totalorder %s2184_s14, %s1934_s23  ;;  %s1939_s11 = sshll.u32 %s2045_s29, 4  ;;  %s1940_s11 = int_to_ptr.vmem [resolvable:$false] %s1939_s11 }
  0x24   : > { %s1941_s24 = scalar_lea.vmem %s1940_s11, 256  ;;  %p1942_p4 = scmp.lt.s32.totalorder %s2184_s14, %s1940_s11 }
  0x25   : > { %p1937_p1 = pnand %p1935_p0, %p1923_p3  ;;  %p1943_p12 = scmp.lt.s32.totalorder %s1941_s24, %s1934_s23 }
  0x27   : > { %p1938_p2 = pneg %p1937_p1  ;;  %p1944_p11 = por %p1943_p12, %p1942_p4 }
  0x29   : > { %p1945_p6 = pnand %p1944_p11, %p1938_p2 }
  0x2b   : > { %1948 = shalt.err (!%p1945_p6)
}
  0x2c   : > { %1830 = dma.hbm_to_vmem [thread:$0]  (!%p2180_p13), %s2176_s28, 128, %s2184_s14, %s303_s17  }
  0x2d   : > { %p2517_p9 = scmp.lt.s32.totalorder %s2043_s12, 3  ;;  %p2518_p7 = scmp.ge.s32.totalorder %s2043_s12, 1 }
  0x2f   : > { %p320_p0 = pnand %p2518_p7, %p2517_p9 }
  0x30   : > { %s2211_s18 = sand.u32 (!%p320_p0), 1, %s2035_s10   ;;  %p2519_p12 = scmp.ne.s32.totalorder (!%p320_p0), %s2513_s20, 0 }
  0x31   : > { %323 = sbr.rel (%p320_p0) target bundleno = 2874 (0xb3a), region = 52  ;;  %s326_s11 = scalar_lea.sflag (!%p320_p0), [#allocation3], %s2211_s18 }
  0x36   : > { %2018 = dma.done.wait (%p2519_p12), %s326_s11, 128  }
  0x37   : > { %2020 = vsyncadd (%p2519_p12), %s326_s11, 4294967168  ;;  %p373_p6 = scmp.lt.s32.totalorder %s2134_s13, 1  ;;  %vm383_vm0 = vcmask 261120   ;;  %v1887_v7 = vld [vmem:[%s2498_s2 + $0x8] sm:$0xff]   ;;  %v2046_v8 = vmov 0.0   ;;  %vm2047_vm1 = vmmov 0   ;;  %v490_v31 = vlaneseq }
  0x38   : > { %1761 = vmatprep.subr.bf16.mxu0 %v2046_v8  ;;  %1765 = vmatprep.mubr.msk.bf16.mxu0 %vm2047_vm1, %v2046_v8  ;;  %v1888_v9 = vld [vmem:[%s2498_s2] sm:$0xff]   ;;  %s2048_s14 = smov 80   ;;  %s2049_s17 = smov 96   ;;  %v2053_v29 = vmov 1983009808   ;;  %vm903_vm2 = vcmask 64512  }
  0x39   : > { %s374_s16 = scalar_select %p373_p6, %s2134_s13, 1  ;;  %1762 = vmatpush3.bf16.msra.mxu0 %v1887_v7  ;;  %1769 = vmatprep.subr.bf16.mxu1 %v2046_v8  ;;  %v1699_v14 = vld [vmem:[%s2497_s1] ss:$0 sm:$0xff]  ;;  %v1700_v16 = vld [vmem:[%s2497_s1 + $0x1] ss:$0 sm:$0xff]  ;;  %v488_v30 = vunpack.c.l.s4 %v2053_v29  ;;  %v2260_v33 = vshrl.u32 %v490_v31, 7 }
  0x3a   : > { %1763 = vmatprep.subr.bf16.mxu0 %v2046_v8  ;;  %1771 = vmatprep.mubr.msk.bf16.mxu1 %vm2047_vm1, %v2046_v8  ;;  %v468_v20 = vld [vmem:[%s2499_s3] sm:$0xff]  ;;  %s2051_s20 = smov 112   ;;  %s2052_s19 = smov 104   ;;  %v2054_v34 = vmov 1934713408   ;;  %vm1057_vm5 = vcmask 1043456  }
  0x3b   : > { %s1698_s28 = sshll.u32 %s374_s16, 3  ;;  %v489_v32 = vunpack.c.0.s8 %v488_v30  ;;  %v520_v35 = vunpack.c.l.s4 %v2054_v34  ;;  %s2055_s26 = smov 32   ;;  %vm1298_vm6 = vcmask 130048   ;;  %vm1300_vm7 = vcmask 195584  }
  0x3c   : > { %s376_s25 = scalar_lea.vmem %s2496_s0, %s1698_s28  ;;  %s2056_s11 = smov 8   ;;  %vm1491_vm8 = vcmask 523264  }
  0x3d   : > { %v2223_v0 = vld [vmem:[%s376_s25] sm:$0xff]  ;;  %1764 = vmatpush3.bf16.msra.mxu0 %v1888_v9  ;;  %s2050_s25 = smov 120   ;;  %v2265_v37 = vsub.s32 %v489_v32, %v2260_v33  ;;  %v521_v38 = vunpack.c.0.s8 %v520_v35  ;;  %s2057_s16 = smov 16  }
  0x3e   : > { %v384_v1 = vsel %vm383_vm0, %v2223_v0, 0.0  ;;  %1775 = vmatprep.subr.bf16.mxu0 %v2046_v8  ;;  %s2058_s28 = smov 24   ;;  %s2060_s29 = smov 64  }
  0x3f   : > { %385 = vadd.xlane.f32.xlu0 %v384_v1  ;;  %v2272_v42 = vsub.s32 %v521_v38, %v2260_v33  ;;  %s1738_s24 = sshll.u32 %s2134_s13, 8  ;;  %p2520_p13 = scmp.ne.s32.totalorder %s2514_s21, 0 }
  0xc8   : > { %v386_v2 = vpop.xlane.xlu0 %385 }
  0xc9   : > { %v388_v3 = vmul.f32 0.03125, %v386_v2 }
  0xcb   : > { %v389_v4 = vsub.f32 %v2223_v0, %v388_v3 }
  0xcd   : > { %v390_v5 = vmul.f32 %v389_v4, %v389_v4 }
  0xcf   : > { %v391_v6 = vsel %vm383_vm0, %v390_v5, 0.0 }
  0xd0   : > { %392 = vadd.xlane.f32.xlu0 %v391_v6 }
 0x159   : > { %v393_v10 = vpop.xlane.xlu0 %392 }
 0x15a   : > { %v394_v11 = vmul.f32 0.03125, %v393_v10 }
 0x15c   : > { %v395_v12 = vadd.f32 1e-05, %v394_v11 }
 0x15e   : > { %1897 = vrsqrt.f32 %v395_v12 }
 0x16b   : > { %v1898_v13 = vpop.eup %1897 }
 0x16c   : > { %v397_v15 = vmul.f32 %v1898_v13, %v389_v4 }
 0x16e   : > { %v402_v17 = vmul.f32 %v1699_v14, %v397_v15 }
 0x170   : > { %v407_v18 = vadd.f32 %v1700_v16, %v402_v17 }
 0x172   : > { %v408_v19 = vpack.c.bf16 %v407_v18, %v407_v18 }
 0x174   : > { %1766 = vmatmul.mubr.msk.bf16.vlgmr.msra.gmra.mxu0 %vm383_vm0, %v408_v19 }
 0x175   : > { %1777 = vmatprep.mubr.msk.bf16.mxu0 %vm2047_vm1, %v2046_v8 }
 0x234   : > { %v2255_v21 = vpop.f32.mrf.mxu0 }
 0x235   : > { %v469_v22 = vmul.f32 %v468_v20, %v2255_v21 }
 0x236   : > { %v1767_v23 = vpop.f32.mrf.mxu0 }
 0x237   : > { %471 = vrot.lane.b32.xlu1 %v469_v22, %s2048_s14  ;;  %s2059_s14 = smov 48  }
 0x238   : > { %v465_v24 = vpop.f32.mrf.mxu0 }
 0x23a   : > { %v1768_v25 = vpop.f32.mrf.mxu0 }
 0x2a9   : > { %v472_v26 = vpop.permute.xlu1 %471 }
 0x2aa   : > { %v474_v27 = vadd.f32 %v472_v26, %v469_v22 }
 0x2ac   : > { %621 = vrot.lane.b32.xlu0 %v474_v27, %s2049_s17  ;;  %476 = vrot.lane.b32.xlu1 %v474_v27, %s2050_s25 }
 0x31e   : > { %v477_v28 = vpop.permute.xlu1 %476  ;;  %v2262_v36 = vpop.permute.xlu0 %621 }
 0x31f   : > { %623 = vrot.lane.b32.xlu1 %v477_v28, %s2049_s17  ;;  %v627_v39 = vcombine.high %v2262_v36, %v2046_v8  ;;  %v634_v41 = vrot.slane %v2262_v36, %v2265_v37  ;;  %s2509_s17 = sshll.u32 %s2211_s18, 3 }
 0x321   : > { %v641_v45 = vrot.slane %v627_v39, %v2265_v37 }
 0x323   : > { %479 = vrot.lane.b32.xlu1 %v474_v27, %s2051_s20  ;;  %s1548_s20 = scalar_lea.sflag [#allocation7], %s2211_s18 }
 0x327   : > { %482 = vrot.lane.b32.xlu1 %v474_v27, %s2052_s19 }
 0x391   : > { %v624_v40 = vpop.permute.xlu1 %623 }
 0x392   : > { %v642_v43 = vcombine.high %v624_v40, %v2046_v8  ;;  %v649_v44 = vrot.slane %v624_v40, %v2265_v37 }
 0x394   : > { %v656_v46 = vrot.slane %v642_v43, %v2265_v37  ;;  %v657_v47 = vcombine.low %v634_v41, %v649_v44  ;;  %v658_v48 = vcombine.high %v634_v41, %v649_v44 }
 0x395   : > { %v480_v49 = vpop.permute.xlu1 %479 }
 0x396   : > { %v665_v50 = vrot.slane %v657_v47, %v2272_v42  ;;  %v672_v51 = vrot.slane %v658_v48, %v2272_v42  ;;  %v673_v52 = vcombine.low %v641_v45, %v656_v46  ;;  %v674_v53 = vcombine.high %v641_v45, %v656_v46 }
 0x397   : > { %v485_v54 = vcombine.low %v474_v27, %v480_v49  ;;  %v486_v55 = vcombine.high %v474_v27, %v480_v49 }
 0x398   : > { %v681_v56 = vrot.slane %v673_v52, %v2272_v42  ;;  %v688_v57 = vrot.slane %v674_v53, %v2272_v42  ;;  %v693_v58 = vcombine.low %v665_v50, %v672_v51  ;;  %v1706_v59 = vcombine.high %v665_v50, %v672_v51 }
 0x399   : > { %v483_v60 = vpop.permute.xlu1 %482  ;;  %v493_v2 = vrot.slane %v485_v54, %v2265_v37  ;;  %v500_v3 = vrot.slane %v486_v55, %v2265_v37 }
 0x39a   : > { %v709_v61 = vcombine.low %v681_v56, %v688_v57  ;;  %v1707_v62 = vcombine.high %v681_v56, %v688_v57  ;;  %v501_v63 = vcombine.low %v477_v28, %v483_v60  ;;  %v502_v1 = vcombine.high %v477_v28, %v483_v60 }
 0x39b   : > { %v700_v4 = vrot.slane %v693_v58, %v2265_v37  ;;  %v708_v5 = vrot.slane %v1706_v59, %v2265_v37  ;;  %v872_v57 = vand.u32 127, %v490_v31  ;;  %v877_v58 = vand.u32 7, %v2260_v33 }
 0x39c   : > { %v509_v6 = vrot.slane %v501_v63, %v2265_v37  ;;  %v516_v7 = vrot.slane %v502_v1, %v2265_v37  ;;  %v716_v9 = vrot.slane %v709_v61, %v2265_v37  ;;  %v724_v10 = vrot.slane %v1707_v62, %v2265_v37 }
 0x39d   : > { %v725_v11 = vcombine.low %v700_v4, %v708_v5  ;;  %v870_v59 = vadd.s32 8, %v2260_v33  ;;  %vm897_vm3 = vcmp.le.s32.totalorder %v872_v57, %v877_v58 }
 0x39e   : > { %v517_v12 = vcombine.low %v493_v2, %v509_v6  ;;  %v518_v13 = vcombine.high %v493_v2, %v509_v6  ;;  %v533_v14 = vcombine.low %v500_v3, %v516_v7  ;;  %v534_v15 = vcombine.high %v500_v3, %v516_v7 }
 0x39f   : > { %v733_v16 = vcombine.low %v716_v9, %v724_v10  ;;  %v732_v22 = vrot.slane %v725_v11, %v2272_v42  ;;  %v884_v60 = vand.u32 7, %v870_v59 }
 0x3a0   : > { %v525_v17 = vrot.slane %v517_v12, %v2272_v42  ;;  %v532_v18 = vrot.slane %v518_v13, %v2272_v42  ;;  %v541_v19 = vrot.slane %v533_v14, %v2272_v42  ;;  %v548_v20 = vrot.slane %v534_v15, %v2272_v42 }
 0x3a1   : > { %v740_v23 = vrot.slane %v733_v16, %v2272_v42  ;;  %vm898_vm4 = vcmp.le.s32.totalorder %v872_v57, %v884_v60 }
 0x3a2   : > { %v553_v24 = vcombine.low %v525_v17, %v532_v18  ;;  %v1704_v25 = vcombine.high %v525_v17, %v532_v18  ;;  %v569_v26 = vcombine.low %v541_v19, %v548_v20  ;;  %v1705_v27 = vcombine.high %v541_v19, %v548_v20 }
 0x3a3   : > { %v741_v28 = vcombine.low %v732_v22, %v740_v23  ;;  %v742_v29 = vcombine.high %v732_v22, %v740_v23 }
 0x3a4   : > { %v560_v30 = vrot.slane %v553_v24, %v2265_v37  ;;  %v568_v32 = vrot.slane %v1704_v25, %v2265_v37  ;;  %v576_v34 = vrot.slane %v569_v26, %v2265_v37  ;;  %v584_v35 = vrot.slane %v1705_v27, %v2265_v37 }
 0x3a5   : > { %v901_v38 = vpack.c.bf16 %v741_v28, %v741_v28  ;;  %v902_v39 = vpack.c.bf16 %v742_v29, %v742_v29 }
 0x3a6   : > { %v586_v40 = vcombine.high %v560_v30, %v568_v32  ;;  %v602_v41 = vcombine.high %v576_v34, %v584_v35  ;;  %v585_v43 = vcombine.low %v560_v30, %v568_v32  ;;  %v601_v44 = vcombine.low %v576_v34, %v584_v35 }
 0x3a7   : > { %v908_v45 = vsel %vm903_vm2, %v901_v38, 0  ;;  %v955_v46 = vsel %vm903_vm2, %v902_v39, 0 }
 0x3a8   : > { %v600_v47 = vrot.slane %v586_v40, %v2272_v42  ;;  %v616_v48 = vrot.slane %v602_v41, %v2272_v42  ;;  %1770 = vmatpush3.bf16.xpose.msra.mxu1 %v908_v45  ;;  %1776 = vmatpush3.bf16.xpose.msra.mxu0 %v955_v46  ;;  %v593_v49 = vrot.slane %v585_v43, %v2272_v42 }
 0x3a9   : > { %v609_v50 = vrot.slane %v601_v44, %v2272_v42  ;;  %1781 = vmatprep.subr.bf16.mxu1 %v2046_v8  ;;  %1787 = vmatprep.subr.bf16.mxu0 %v2046_v8 }
 0x3aa   : > { %v619_v51 = vcombine.low %v600_v47, %v616_v48  ;;  %v620_v52 = vcombine.high %v600_v47, %v616_v48 }
 0x3ab   : > { %v617_v53 = vcombine.low %v593_v49, %v609_v50  ;;  %v618_v54 = vcombine.high %v593_v49, %v609_v50 }
 0x3ac   : > { %v900_v55 = vpack.c.bf16 %v620_v52, %v619_v51 }
 0x3ad   : > { %v899_v56 = vpack.c.bf16 %v618_v54, %v617_v53 }
 0x3af   : > { %1772 = vmatmul.mubr.msk.bf16.vlgmr.msra.gmra.mxu1 %vm903_vm2, %v899_v56  ;;  %1778 = vmatmul.mubr.msk.bf16.vlgmr.msra.gmra.mxu0 %vm903_vm2, %v900_v55 }
 0x3b0   : > { %1783 = vmatprep.mubr.msk.bf16.mxu1 %vm2047_vm1, %v2046_v8  ;;  %1789 = vmatprep.mubr.msk.bf16.mxu0 %vm2047_vm1, %v2046_v8 }
 0x46f   : > { %v944_v61 = vpop.f32.mrf.mxu1  ;;  %v991_v62 = vpop.f32.mrf.mxu0 }
 0x470   : > { %v1002_v63 = vsel %vm897_vm3, %v944_v61, -1e+30  ;;  %v1004_v4 = vsel %vm897_vm3, %v991_v62, -1e+30 }
 0x471   : > { %v1773_v1 = vpop.f32.mrf.mxu1  ;;  %v1779_v2 = vpop.f32.mrf.mxu0  ;;  %v1006_v3 = vsel %vm903_vm2, %v1002_v63, -inf  ;;  %v1012_v33 = vsel %vm903_vm2, %v1004_v4, -inf }
 0x472   : > { %1007 = vmax.xlane.f32.xlu1 %v1006_v3 }
 0x473   : > { %v947_v5 = vpop.f32.mrf.mxu1  ;;  %v994_v6 = vpop.f32.mrf.mxu0 }
 0x474   : > { %v1003_v7 = vsel %vm898_vm4, %v947_v5, -1e+30  ;;  %v1005_v11 = vsel %vm898_vm4, %v994_v6, -1e+30 }
 0x475   : > { %v1774_v31 = vpop.f32.mrf.mxu1  ;;  %v1780_v9 = vpop.f32.mrf.mxu0  ;;  %v1009_v10 = vsel %vm903_vm2, %v1003_v7, -inf  ;;  %v1015_v12 = vsel %vm903_vm2, %v1005_v11, -inf }
 0x476   : > { %1010 = vmax.xlane.f32.xlu0 %v1009_v10  ;;  %1013 = vmax.xlane.f32.xlu1 %v1012_v33 }
 0x47a   : > { %1016 = vmax.xlane.f32.xlu1 %v1015_v12 }
 0x48c   : > { %744 = vrot.lane.b32.xlu0 %v2255_v21, %s2050_s25  ;;  %s2393_s25 = scalar_lea.vmem [#allocation6], %s2509_s17 }
 0x4fb   : > { %v1008_v13 = vpop.xlane.xlu1 %1007 }
 0x4fc   : > { %v1018_v14 = vsub.f32 %v1002_v63, %v1008_v13 }
 0x4fe   : > { %v1022_v15 = vmul.f32 1.442695, %v1018_v14 }
 0x4ff   : > { %v1011_v16 = vpop.xlane.xlu0 %1010  ;;  %v1014_v17 = vpop.xlane.xlu1 %1013 }
 0x500   : > { %1899 = vpow2.f32 %v1022_v15  ;;  %v1019_v18 = vsub.f32 %v1003_v7, %v1011_v16  ;;  %v1020_v19 = vsub.f32 %v1004_v4, %v1014_v17 }
 0x502   : > { %v1026_v20 = vmul.f32 1.442695, %v1020_v19  ;;  %v1024_v22 = vmul.f32 1.442695, %v1019_v18 }
 0x503   : > { %v745_v23 = vpop.permute.xlu0 %744  ;;  %v1017_v24 = vpop.xlane.xlu1 %1016 }
 0x504   : > { %v1021_v25 = vsub.f32 %v1005_v11, %v1017_v24  ;;  %748 = vrot.lane.b32.xlu0 %v745_v23, %s2055_s26  ;;  %1901 = vpow2.f32 %v1026_v20 }
 0x505   : > { %1903 = vpow2.f32 %v1024_v22 }
 0x506   : > { %v1028_v26 = vmul.f32 1.442695, %v1021_v25 }
 0x508   : > { %1905 = vpow2.f32 %v1028_v26 }
 0x50d   : > { %v1900_v27 = vpop.eup %1899 }
 0x50e   : > { %v1030_v28 = vsel %vm903_vm2, %v1900_v27, 0.0 }
 0x50f   : > { %1031 = vadd.xlane.f32.xlu1 %v1030_v28 }
 0x511   : > { %v1902_v29 = vpop.eup %1901 }
 0x512   : > { %v1036_v30 = vsel %vm903_vm2, %v1902_v29, 0.0  ;;  %v1904_v32 = vpop.eup %1903 }
 0x513   : > { %1037 = vadd.xlane.f32.xlu1 %v1036_v30  ;;  %v1033_v34 = vsel %vm903_vm2, %v1904_v32, 0.0 }
 0x515   : > { %v1906_v35 = vpop.eup %1905 }
 0x516   : > { %v1039_v38 = vsel %vm903_vm2, %v1906_v35, 0.0 }
 0x517   : > { %1034 = vadd.xlane.f32.xlu1 %v1033_v34 }
 0x51b   : > { %1040 = vadd.xlane.f32.xlu1 %v1039_v38 }
 0x52c   : > { %746 = vrot.lane.b32.xlu1 %v2255_v21, %s2055_s26  ;;  %s2061_s26 = smov [#allocation6]  }
 0x52d   : > { %s1953_s27 = sshll.u32 %s2061_s26, 4  ;;  %s1954_s27 = int_to_ptr.vmem [resolvable:$false] %s1953_s27 }
 0x52e   : > { %s1955_s23 = scalar_lea.vmem %s1954_s27, 256 }
 0x576   : > { %v749_v43 = vpop.permute.xlu0 %748 }
 0x577   : > { %v767_v45 = vcombine.high %v749_v43, %v2046_v8  ;;  %v774_v47 = vrot.slane %v749_v43, %v2265_v37 }
 0x579   : > { %v781_v50 = vrot.slane %v767_v45, %v2265_v37 }
 0x598   : > { %v1032_v39 = vpop.xlane.xlu1 %1031 }
 0x599   : > { %1907 = vrcp.f32 %v1032_v39 }
 0x59c   : > { %v1038_v40 = vpop.xlane.xlu1 %1037 }
 0x5a0   : > { %v1035_v41 = vpop.xlane.xlu1 %1034 }
 0x5a1   : > { %1909 = vrcp.f32 %v1035_v41 }
 0x5a4   : > { %v1041_v44 = vpop.xlane.xlu1 %1040 }
 0x5a5   : > { %1911 = vrcp.f32 %v1041_v44 }
 0x5a6   : > { %1913 = vrcp.f32 %v1038_v40  ;;  %v1908_v7 = vpop.eup %1907 }
 0x5a7   : > { %v1046_v20 = vmul.f32 %v1908_v7, %v1900_v27 }
 0x5a8   : > { %v747_v46 = vpop.permute.xlu1 %746 }
 0x5a9   : > { %v752_v48 = vcombine.high %v747_v46, %v2046_v8  ;;  %v759_v49 = vrot.slane %v747_v46, %v2265_v37 }
 0x5ab   : > { %v766_v51 = vrot.slane %v752_v48, %v2265_v37  ;;  %v782_v52 = vcombine.low %v759_v49, %v774_v47  ;;  %v783_v53 = vcombine.high %v759_v49, %v774_v47 }
 0x5ad   : > { %v790_v54 = vrot.slane %v782_v52, %v2272_v42  ;;  %v797_v55 = vrot.slane %v783_v53, %v2272_v42  ;;  %v798_v56 = vcombine.low %v766_v51, %v781_v50  ;;  %v799_v57 = vcombine.high %v766_v51, %v781_v50 }
 0x5ae   : > { %v1910_v31 = vpop.eup %1909 }
 0x5af   : > { %v806_v58 = vrot.slane %v798_v56, %v2272_v42  ;;  %v813_v59 = vrot.slane %v799_v57, %v2272_v42  ;;  %v818_v60 = vcombine.low %v790_v54, %v797_v55  ;;  %v1708_v61 = vcombine.high %v790_v54, %v797_v55 }
 0x5b0   : > { %v1047_v16 = vmul.f32 %v1910_v31, %v1904_v32 }
 0x5b1   : > { %v825_v62 = vrot.slane %v818_v60, %v2265_v37  ;;  %v833_v63 = vrot.slane %v1708_v61, %v2265_v37  ;;  %v834_v1 = vcombine.low %v806_v58, %v813_v59  ;;  %v1709_v2 = vcombine.high %v806_v58, %v813_v59  ;;  %v1889_v58 = vld [vmem:[%s2500_s4 + $0x8] sm:$0xff]  }
 0x5b2   : > { %v1912_v33 = vpop.eup %1911  ;;  %v1050_v23 = vpack.c.bf16 %v1047_v16, %v1046_v20 }
 0x5b3   : > { %v841_v3 = vrot.slane %v834_v1, %v2265_v37  ;;  %v849_v4 = vrot.slane %v1709_v2, %v2265_v37  ;;  %v850_v5 = vcombine.low %v825_v62, %v833_v63  ;;  %v1914_v11 = vpop.eup %1913  ;;  %v1049_v17 = vmul.f32 %v1912_v33, %v1906_v35 }
 0x5b4   : > { %v1048_v22 = vmul.f32 %v1914_v11, %v1902_v29 }
 0x5b5   : > { %v858_v6 = vcombine.low %v841_v3, %v849_v4  ;;  %v857_v9 = vrot.slane %v850_v5, %v2272_v42  ;;  %v1890_v4 = vld [vmem:[%s2500_s4] sm:$0xff]  }
 0x5b6   : > { %v1051_v24 = vpack.c.bf16 %v1049_v17, %v1048_v22 }
 0x5b7   : > { %v865_v10 = vrot.slane %v858_v6, %v2272_v42 }
 0x5b9   : > { %v866_v12 = vcombine.low %v857_v9, %v865_v10  ;;  %v867_v13 = vcombine.high %v857_v9, %v865_v10 }
 0x5bb   : > { %v1052_v14 = vpack.c.bf16 %v866_v12, %v866_v12  ;;  %v1053_v15 = vpack.c.bf16 %v867_v13, %v867_v13 }
 0x5bd   : > { %v1059_v18 = vsel %vm1057_vm5, %v1052_v14, 0  ;;  %v1106_v19 = vsel %vm1057_vm5, %v1053_v15, 0 }
 0x5be   : > { %1782 = vmatpush3.bf16.msra.mxu1 %v1059_v18  ;;  %1788 = vmatpush3.bf16.msra.mxu0 %v1106_v19 }
 0x5bf   : > { %1793 = vmatprep.subr.bf16.mxu1 %v2046_v8  ;;  %1801 = vmatprep.subr.bf16.mxu0 %v2046_v8 }
 0x5c1   : > { %1784 = vmatmul.mubr.msk.bf16.vlgmr.msra.gmra.mxu1 %vm903_vm2, %v1050_v23  ;;  %1790 = vmatmul.mubr.msk.bf16.vlgmr.msra.gmra.mxu0 %vm903_vm2, %v1051_v24 }
 0x5c2   : > { %1797 = vmatprep.mubr.msk.bf16.mxu1 %vm2047_vm1, %v2046_v8  ;;  %1805 = vmatprep.mubr.msk.bf16.mxu0 %vm2047_vm1, %v2046_v8 }
 0x5c3   : > { %1794 = vmatpush3.bf16.msra.mxu1 %v1889_v58 }
 0x5c4   : > { %1795 = vmatprep.subr.bf16.mxu1 %v2046_v8 }
 0x5c7   : > { %1796 = vmatpush3.bf16.msra.mxu1 %v1890_v4 }
 0x5c8   : > { %1809 = vmatprep.subr.bf16.mxu1 %v2046_v8 }
 0x681   : > { %v1095_v25 = vpop.f32.mrf.mxu1  ;;  %v1142_v26 = vpop.f32.mrf.mxu0 }
 0x682   : > { %v1149_v29 = vcombine.low %v1095_v25, %v1142_v26  ;;  %v1150_v30 = vcombine.high %v1095_v25, %v1142_v26 }
 0x683   : > { %v1785_v27 = vpop.f32.mrf.mxu1  ;;  %v1791_v28 = vpop.f32.mrf.mxu0 }
 0x684   : > { %v1157_v41 = vrot.slane %v1149_v29, %v2265_v37  ;;  %v1164_v43 = vrot.slane %v1150_v30, %v2265_v37  ;;  %v1892_v30 = vld [vmem:[%s2501_s5] sm:$0xff]  }
 0x685   : > { %v1098_v32 = vpop.f32.mrf.mxu1  ;;  %v1145_v34 = vpop.f32.mrf.mxu0 }
 0x686   : > { %v1165_v35 = vcombine.low %v1098_v32, %v1145_v34  ;;  %v1166_v38 = vcombine.high %v1098_v32, %v1145_v34 }
 0x687   : > { %v1786_v39 = vpop.f32.mrf.mxu1  ;;  %v1792_v40 = vpop.f32.mrf.mxu0 }
 0x688   : > { %v1173_v44 = vrot.slane %v1165_v35, %v2265_v37  ;;  %v1180_v45 = vrot.slane %v1166_v38, %v2265_v37  ;;  %v1719_v38 = vld [vmem:[%s2497_s1 + $0x2] ss:$0 sm:$0xff]  ;;  %v1720_v40 = vld [vmem:[%s2497_s1 + $0x3] ss:$0 sm:$0xff] }
 0x68a   : > { %v1181_v46 = vcombine.low %v1157_v41, %v1173_v44  ;;  %v1182_v47 = vcombine.high %v1157_v41, %v1173_v44  ;;  %v1197_v48 = vcombine.low %v1164_v43, %v1180_v45  ;;  %v1198_v49 = vcombine.high %v1164_v43, %v1180_v45  ;;  %v1893_v45 = vld [vmem:[%s2502_s6 + $0x18] sm:$0xff]  }
 0x68c   : > { %v1189_v50 = vrot.slane %v1181_v46, %v2272_v42  ;;  %v1196_v51 = vrot.slane %v1182_v47, %v2272_v42  ;;  %v1205_v52 = vrot.slane %v1197_v48, %v2272_v42  ;;  %v1212_v53 = vrot.slane %v1198_v49, %v2272_v42  ;;  %v1894_v46 = vld [vmem:[%s2502_s6 + $0x10] sm:$0xff]   ;;  %v1895_v47 = vld [vmem:[%s2502_s6 + $0x8] sm:$0xff]  }
 0x68e   : > { %v1217_v54 = vcombine.low %v1189_v50, %v1196_v51  ;;  %v1714_v55 = vcombine.high %v1189_v50, %v1196_v51  ;;  %v1233_v56 = vcombine.low %v1205_v52, %v1212_v53  ;;  %v1715_v57 = vcombine.high %v1205_v52, %v1212_v53 }
 0x690   : > { %v1224_v59 = vrot.slane %v1217_v54, %v2265_v37  ;;  %v1232_v60 = vrot.slane %v1714_v55, %v2265_v37  ;;  %v1240_v61 = vrot.slane %v1233_v56, %v2265_v37  ;;  %v1248_v62 = vrot.slane %v1715_v57, %v2265_v37  ;;  %v1896_v55 = vld [vmem:[%s2502_s6] sm:$0xff]  }
 0x692   : > { %v1249_v63 = vcombine.low %v1224_v59, %v1232_v60  ;;  %v1265_v1 = vcombine.low %v1240_v61, %v1248_v62  ;;  %v1250_v2 = vcombine.high %v1224_v59, %v1232_v60  ;;  %v1266_v3 = vcombine.high %v1240_v61, %v1248_v62 }
 0x694   : > { %v1257_v5 = vrot.slane %v1249_v63, %v2272_v42  ;;  %v1273_v6 = vrot.slane %v1265_v1, %v2272_v42  ;;  %v1264_v37 = vrot.slane %v1250_v2, %v2272_v42  ;;  %v1280_v31 = vrot.slane %v1266_v3, %v2272_v42 }
 0x696   : > { %v1282_v7 = vcombine.high %v1257_v5, %v1273_v6  ;;  %v1281_v9 = vcombine.low %v1257_v5, %v1273_v6  ;;  %v1283_v10 = vcombine.low %v1264_v37, %v1280_v31  ;;  %v1284_v33 = vcombine.high %v1264_v37, %v1280_v31 }
 0x698   : > { %1286 = vrot.lane.b32.xlu0 %v1282_v7, %s2056_s11  ;;  %s1575_s11 = sshll.u32 %s2393_s25, 4  ;;  %s1576_s11 = int_to_ptr.vmem [resolvable:$true] %s1575_s11 }
 0x699   : > { %s1949_s19 = scalar_lea.vmem %s1576_s11, 128  ;;  %p1956_p5 = scmp.lt.s32.totalorder %s1576_s11, %s1954_s27 }
 0x69a   : > { %p1950_p11 = scmp.ne.s32.totalorder %s1576_s11, %s1949_s19  ;;  %p1957_p8 = scmp.lt.s32.totalorder %s1955_s23, %s1949_s19 }
 0x69c   : > { %1290 = vrot.lane.b32.xlu0 %v1283_v10, %s2057_s16  ;;  %p1951_p1 = pnand %p1950_p11, %p2520_p13  ;;  %p1958_p10 = por %p1957_p8, %p1956_p5 }
 0x69e   : > { %p1952_p3 = pneg %p1951_p1 }
 0x6a0   : > { %1294 = vrot.lane.b32.xlu0 %v1284_v33, %s2058_s28  ;;  %p1959_p2 = pnand %p1958_p10, %p1952_p3 }
 0x70a   : > { %v1287_v11 = vpop.permute.xlu0 %1286 }
 0x70b   : > { %v1297_v13 = vsel %vm903_vm2, %v1281_v9, %v1287_v11 }
 0x70e   : > { %v1291_v12 = vpop.permute.xlu0 %1290 }
 0x70f   : > { %v1299_v14 = vsel %vm1298_vm6, %v1297_v13, %v1291_v12 }
 0x712   : > { %v1295_v15 = vpop.permute.xlu0 %1294 }
 0x713   : > { %v1301_v42 = vsel %vm1300_vm7, %v1299_v14, %v1295_v15 }
 0x714   : > { %v1302_v16 = vpack.c.bf16 %v1301_v42, %v1301_v42 }
 0x716   : > { %1798 = vmatmul.mubr.msk.bf16.vlgmr.msra.gmra.mxu1 %vm383_vm0, %v1302_v16 }
 0x717   : > { %1817 = vmatprep.mubr.msk.bf16.mxu1 %vm2047_vm1, %v2046_v8  ;;  %1810 = vmatpush3.bf16.msra.mxu1 %v1893_v45 }
 0x718   : > { %1811 = vmatprep.subr.bf16.mxu1 %v2046_v8 }
 0x71b   : > { %1812 = vmatpush3.bf16.msra.mxu1 %v1894_v46 }
 0x71c   : > { %1813 = vmatprep.subr.bf16.mxu1 %v2046_v8 }
 0x71f   : > { %1814 = vmatpush3.bf16.msra.mxu1 %v1895_v47 }
 0x720   : > { %1815 = vmatprep.subr.bf16.mxu1 %v2046_v8 }
 0x723   : > { %1816 = vmatpush3.bf16.msra.mxu1 %v1896_v55 }
 0x7d6   : > { %v1356_v17 = vpop.f32.mrf.mxu1 }
 0x7d7   : > { %v2382_v18 = vadd.f32 %v1356_v17, %v2223_v0 }
 0x7d8   : > { %v1799_v19 = vpop.f32.mrf.mxu1 }
 0x7d9   : > { %v1363_v20 = vsel %vm383_vm0, %v2382_v18, 0.0 }
 0x7da   : > { %1364 = vadd.xlane.f32.xlu1 %v1363_v20  ;;  %v1359_v22 = vpop.f32.mrf.mxu1 }
 0x7dc   : > { %v1800_v23 = vpop.f32.mrf.mxu1 }
 0x7eb   : > { %1537 = vrot.lane.b32.xlu1 %v2255_v21, %s2059_s14  ;;  %v1891_v21 = vld [vmem:[%s2501_s5 + $0x8] sm:$0xff]   ;;  %s1573_s14 = scalar_lea.hbm %s2505_s9, %s1738_s24 }
 0x7ec   : > { %1802 = vmatpush3.bf16.msra.mxu0 %v1891_v21 }
 0x7ed   : > { %1803 = vmatprep.subr.bf16.mxu0 %v2046_v8 }
 0x7f0   : > { %1804 = vmatpush3.bf16.msra.mxu0 %v1892_v30 }
 0x863   : > { %v1365_v24 = vpop.xlane.xlu1 %1364 }
 0x864   : > { %v1366_v25 = vmul.f32 0.03125, %v1365_v24 }
 0x866   : > { %v1367_v26 = vsub.f32 %v2382_v18, %v1366_v25 }
 0x867   : > { %v1538_v27 = vpop.permute.xlu1 %1537 }
 0x868   : > { %v1540_v0 = vsel %vm1298_vm6, %v2262_v36, %v1538_v27  ;;  %v1368_v28 = vmul.f32 %v1367_v26, %v1367_v26 }
 0x869   : > { %1541 = vst.msk [vmem:[%s2393_s25] sm:$0xff] %vm383_vm0, %v1540_v0 }
 0x86a   : > { %v1369_v29 = vsel %vm383_vm0, %v1368_v28, 0.0 }
 0x86b   : > { %1370 = vadd.xlane.f32.xlu0 %v1369_v29 }
 0x8f4   : > { %v1371_v36 = vpop.xlane.xlu0 %1370 }
 0x8f5   : > { %v1372_v32 = vmul.f32 0.03125, %v1371_v36 }
 0x8f7   : > { %v1373_v34 = vadd.f32 1e-05, %v1372_v32 }
 0x8f9   : > { %1915 = vrsqrt.f32 %v1373_v34 }
 0x906   : > { %v1916_v35 = vpop.eup %1915 }
 0x907   : > { %v1375_v39 = vmul.f32 %v1916_v35, %v1367_v26 }
 0x909   : > { %v1380_v41 = vmul.f32 %v1719_v38, %v1375_v39 }
 0x90b   : > { %v1385_v43 = vadd.f32 %v1720_v40, %v1380_v41 }
 0x90d   : > { %v1386_v44 = vpack.c.bf16 %v1385_v43, %v1385_v43 }
 0x90f   : > { %1806 = vmatmul.mubr.msk.bf16.vlgmr.msra.gmra.mxu0 %vm383_vm0, %v1386_v44 }
 0x9cf   : > { %v1440_v48 = vpop.f32.mrf.mxu0 }
 0x9d0   : > { %v1724_v49 = vmul.f32 -1.442695, %v1440_v48 }
 0x9d1   : > { %v1807_v50 = vpop.f32.mrf.mxu0 }
 0x9d2   : > { %1917 = vpow2.f32 %v1724_v49 }
 0x9d3   : > { %v1443_v51 = vpop.f32.mrf.mxu0 }
 0x9d5   : > { %v1808_v52 = vpop.f32.mrf.mxu0 }
 0x9df   : > { %v1918_v53 = vpop.eup %1917 }
 0x9e0   : > { %v1449_v54 = vadd.f32 1.0, %v1918_v53 }
 0x9e2   : > { %1919 = vrcp.f32 %v1449_v54 }
 0x9ef   : > { %v1920_v56 = vpop.eup %1919 }
 0x9f0   : > { %v1452_v8 = vmul.f32 %v1920_v56, %v1440_v48 }
 0x9f2   : > { %1454 = vrot.lane.b32.xlu0 %v1452_v8, %s2060_s29 }
 0xa64   : > { %v1455_v57 = vpop.permute.xlu0 %1454 }
 0xa65   : > { %v1457_v58 = vmul.f32 %v1455_v57, %v1440_v48 }
 0xa67   : > { %v1458_v59 = vpack.c.bf16 %v1457_v58, %v1457_v58 }
 0xa69   : > { %1818 = vmatmul.mubr.msk.bf16.vlgmr.msra.gmra.mxu1 %vm1491_vm8, %v1458_v59 }
 0xa6a   : > { %1962 = shalt.err (!%p1959_p2)
}
 0xa6b   : > { %s1963_s25 = scalar_lea.hbm %s1573_s14, 128  ;;  %s1967_s16 = scalar_lea.hbm %s2505_s9, 512 }
 0xa6c   : > { %p1964_p4 = scmp.ne.s32.totalorder %s1573_s14, %s1963_s25  ;;  %p1968_p0 = scmp.lt.s32.totalorder %s1573_s14, %s2505_s9 }
 0xa6d   : > { %p1969_p12 = scmp.lt.s32.totalorder %s1967_s16, %s1963_s25 }
 0xa6e   : > { %p1965_p9 = pnand %p1964_p4, %p2520_p13 }
 0xa6f   : > { %p1970_p6 = por %p1969_p12, %p1968_p0 }
 0xa70   : > { %p1966_p7 = pneg %p1965_p9 }
 0xa72   : > { %p1971_p11 = pnand %p1970_p6, %p1966_p7 }
 0xa74   : > { %1974 = shalt.err (!%p1971_p11)
}
 0xa75   : > { %1824 = dma.vmem_to_hbm [thread:$0]  (%p2520_p13), %s1576_s11, 128, %s1573_s14, %s1548_s20  }
 0xa76   : > { %s1732_s19 = sshll.u32 %s2134_s13, 7  ;;  %s2521_s26 = sshll.u32 %s2211_s18, 3 }
 0xa77   : > { %s365_s27 = scalar_lea.vmem [#allocation5], %s2521_s26  ;;  %s2452_s25 = scalar_lea.hbm %s2504_s8, %s1732_s19 }
 0xa78   : > { %s1561_s23 = sshll.u32 %s365_s27, 4  ;;  %s1543_s13 = scalar_lea.sflag [#allocation4], %s2211_s18  ;;  %s2454_s23 = int_to_ptr.vmem [resolvable:$true] %s1561_s23 }
 0xa79   : > { %s1975_s11 = scalar_lea.vmem %s2454_s23, 128  ;;  %s2062_s14 = smov [#allocation5]  }
 0xa7a   : > { %p1976_p1 = scmp.ne.s32.totalorder %s2454_s23, %s1975_s11  ;;  %s1979_s20 = sshll.u32 %s2062_s14, 4  ;;  %s1980_s20 = int_to_ptr.vmem [resolvable:$false] %s1979_s20 }
 0xa7b   : > { %s1981_s24 = scalar_lea.vmem %s1980_s20, 256  ;;  %p1982_p8 = scmp.lt.s32.totalorder %s2454_s23, %s1980_s20 }
 0xa7c   : > { %p1977_p3 = pnand %p1976_p1, %p2520_p13  ;;  %p1983_p10 = scmp.lt.s32.totalorder %s1981_s24, %s1975_s11 }
 0xa7e   : > { %p1978_p5 = pneg %p1977_p3  ;;  %p1984_p2 = por %p1983_p10, %p1982_p8 }
 0xa80   : > { %p1985_p4 = pnand %p1984_p2, %p1978_p5 }
 0xb29   : > { %v1529_v60 = vpop.f32.mrf.mxu1 }
 0xb2a   : > { %v1535_v61 = vadd.f32 %v1529_v60, %v2382_v18 }
 0xb2b   : > { %v1819_v62 = vpop.f32.mrf.mxu1 }
 0xb2c   : > { %1536 = vst.msk [vmem:[%s365_s27] sm:$0xff] %vm383_vm0, %v1535_v61 }
 0xb2d   : > { %v1532_v63 = vpop.f32.mrf.mxu1 }
 0xb2e   : > { %1988 = shalt.err (!%p1985_p4)
}
 0xb2f   : > { %s1989_s16 = scalar_lea.hbm %s2452_s25, 128  ;;  %s1993_s19 = scalar_lea.hbm %s2504_s8, 256 }
 0xb30   : > { %p1990_p9 = scmp.ne.s32.totalorder %s2452_s25, %s1989_s16  ;;  %p1994_p12 = scmp.lt.s32.totalorder %s2452_s25, %s2504_s8 }
 0xb31   : > { %p1995_p6 = scmp.lt.s32.totalorder %s1993_s19, %s1989_s16 }
 0xb32   : > { %p1991_p7 = pnand %p1990_p9, %p2520_p13 }
 0xb33   : > { %p1996_p11 = por %p1995_p6, %p1994_p12 }
 0xb34   : > { %p1992_p0 = pneg %p1991_p7 }
 0xb36   : > { %p1997_p1 = pnand %p1996_p11, %p1992_p0 }
 0xb38   : > { %2000 = shalt.err (!%p1997_p1)
}
 0xb39   : > { %1823 = dma.vmem_to_hbm [thread:$0]  (%p2520_p13), %s2454_s23, 128, %s2452_s25, %s1543_s13   ;;  %v1820_v1 = vpop.f32.mrf.mxu1 }
 0xb3a PF: > { %s1587_s17 = sand.u32 1, %s2031_s30   ;;  %p2522_p3 = scmp.ne.s32.totalorder %s2515_s22, 0 }
 0xb3b   : > { %p2523_p5 = scmp.ge.s32.totalorder %s2043_s12, 2  ;;  %s1588_s29 = scalar_lea.sflag [#allocation4], %s1587_s17 }
 0xb3d   : > { %p1832_p8 = pnand %p2523_p5, %p2522_p3 }
 0xb3f   : > { %p1833_p10 = pneg %p1832_p8 }
 0xb41   : > { %2022 = dma.done.wait (%p1833_p10), %s1588_s29, 128  }
 0xb42   : > { %2024 = vsyncadd (%p1833_p10), %s1588_s29, 4294967168  ;;  %s1597_s11 = scalar_lea.sflag [#allocation7], %s1587_s17 }
 0xb43   : > { %2026 = dma.done.wait (%p1833_p10), %s1597_s11, 128  }
 0xb44   : > { %2028 = vsyncadd (%p1833_p10), %s1597_s11, 4294967168  ;;  %s2524_s21 = sld [smem:[#allocation11_spill]]  ;;  %p26_p13 = scmp.ge.s32.totalorder %s2138_s15, 4  }
 0xb45   : > { %s2525_s11 = sld [smem:[#allocation12_spill]]  ;;  %s2526_s30 = smov %s2035_s10 }
 0xb46   : > { %s2528_s12 = smov %s2138_s15  ;;  %28 = sbr.rel (!%p26_p13) target bundleno = 7 (0x7), region = 117 }
 0xb4a   : > { %s2527_s10 = smov %s2524_s21 }
 0xb4b   :  { %1602 = vsyncpa [#allocation3], 1 }
 0xb4c   :  { %1604 = vsyncpa [#allocation3 + $0x1], 1 }
 0xb4d   :  { %1605 = vsyncpa [#allocation4], 1 }
 0xb4e   :  { %1607 = vsyncpa [#allocation4 + $0x1], 1 }
 0xb4f   :  { %1608 = vsyncpa [#allocation7], 1 }
 0xb50   :  { %1610 = vsyncpa [#allocation7 + $0x1], 1 }

</bundles_post_ra>
